<compile_context>
chip_gen: v7x
topology: tpu7x:2x2x1
jax: 0.10.0
libtpu: 0.0.40
codegen_flags: <defaults>
</compile_context>

<pallas_src>
import numpy as np
import jax
import jax.numpy as jnp
from jax.experimental import pallas as pl
from jax.experimental.pallas import tpu as pltpu

WIN_SIZE = 11
WIN_SIGMA = 1.5
K1, K2 = 0.01, 0.03
DATA_RANGE = 1.0
C1 = (K1 * DATA_RANGE) ** 2
C2 = (K2 * DATA_RANGE) ** 2


def _round_up(x, m):
    return ((x + m - 1) // m) * m


def _gaussian_window_1d(size=WIN_SIZE, sigma=WIN_SIGMA):
    coords = np.arange(size, dtype=np.float64) - size // 2
    g = np.exp(-(coords ** 2) / (2.0 * sigma ** 2))
    g /= g.sum()
    return g.astype(np.float32)


def _band_matrix(out_len, in_len, g):
    # F[i, i:i+win] = g  ->  (F @ z)[i] = sum_k g[k] * z[i+k]  (valid cross-corr)
    f = np.zeros((out_len, in_len), dtype=np.float32)
    for i in range(out_len):
        f[i, i:i + len(g)] = g
    return f


def _ssim_kernel(x_ref, y_ref, fh_ref, fwt_ref, o_ref, t_ref):
    # x_ref, y_ref : (B, H_pad, W_pad)     f32   B images of the flat (N*C) axis
    # fh_ref       : (Ho_pad, H_pad)       f32   zero-padded row band matrix
    # fwt_ref      : (W_pad, Wo_pad)       f32   zero-padded col band matrix (T)
    # o_ref        : (1, 1, Wo_pad)        f32   partial column sums of (ssim-1)
    # t_ref        : (B*Ho_pad, 5*W_pad)   f32   VMEM scratch (aligned)
    fh = fh_ref[...]
    fwt = fwt_ref[...]
    B, _, W_pad = x_ref.shape
    Ho_pad = fh_ref.shape[0]

    # ---- stage 1: per image, Fh @ [x | y | x*x | y*y | x*y] -------------------
    # All concat boundaries are multiples of 128 lanes; results go straight into
    # the aligned scratch (no list+concat, live ranges bounded per iteration).
    for b in range(B):
        xb = x_ref[b]                                   # (H_pad, W_pad)
        yb = y_ref[b]
        zb = jnp.concatenate([xb, yb, xb * xb, yb * yb, xb * yb], axis=-1)
        t_ref[b * Ho_pad:(b + 1) * Ho_pad, :] = jnp.dot(
            fh, zb, preferred_element_type=jnp.float32)  # (Ho_pad, 5*W_pad)

    # ---- stage 2: one matmul per statistic, fused over the whole block --------
    # Slices are 128-lane aligned (W padded), M = B*Ho_pad.
    mu1 = jnp.dot(t_ref[:, 0 * W_pad:1 * W_pad], fwt, preferred_element_type=jnp.float32)
    mu2 = jnp.dot(t_ref[:, 1 * W_pad:2 * W_pad], fwt, preferred_element_type=jnp.float32)
    e_xx = jnp.dot(t_ref[:, 2 * W_pad:3 * W_pad], fwt, preferred_element_type=jnp.float32)
    e_yy = jnp.dot(t_ref[:, 3 * W_pad:4 * W_pad], fwt, preferred_element_type=jnp.float32)
    e_xy = jnp.dot(t_ref[:, 4 * W_pad:5 * W_pad], fwt, preferred_element_type=jnp.float32)

    mu1_sq = mu1 * mu1
    mu2_sq = mu2 * mu2
    mu1_mu2 = mu1 * mu2
    sigma1_sq = e_xx - mu1_sq
    sigma2_sq = e_yy - mu2_sq
    sigma12 = e_xy - mu1_mu2

    # Single fused divide (denominators >= C1*C2 > 0).  We accumulate
    # (ssim - 1) = (num - den) / den: at every padded row/col and every
    # zero-padded image num == den bit-exactly, so padding contributes 0.
    num = (2.0 * mu1_mu2 + C1) * (2.0 * sigma12 + C2)
    den = (mu1_sq + mu2_sq + C1) * (sigma1_sq + sigma2_sq + C2)
    diff = (num - den) / den                              # (B*Ho_pad, Wo_pad)

    # Partial reduction only (sum over sublanes); the scalar epilogue runs in
    # plain JAX, so the grid axis stays fully parallel.
    o_ref[...] = jnp.sum(diff, axis=0, keepdims=True)[None]   # (1, 1, Wo_pad)


def ssim_loss_pallas(outputs, imgs, block_images=None):
    """outputs, imgs: (N, C, H, W) float32 in [0, data_range]. Returns scalar loss."""
    N, Ch, H, W = outputs.shape
    Ho, Wo = H - WIN_SIZE + 1, W - WIN_SIZE + 1
    assert Ho > 0 and Wo > 0, "spatial dims must be >= 11"
    NC = N * Ch

    H_pad = _round_up(H, 8)
    W_pad = _round_up(W, 128)
    Ho_pad = _round_up(Ho, 8)
    Wo_pad = _round_up(Wo, 128)

    g = _gaussian_window_1d()
    fh_np = np.zeros((Ho_pad, H_pad), np.float32)
    fh_np[:Ho, :H] = _band_matrix(Ho, H, g)               # (Ho, H) band
    fwt_np = np.zeros((W_pad, Wo_pad), np.float32)
    fwt_np[:W, :Wo] = _band_matrix(Wo, W, g).T            # (W, Wo) band^T
    fh = jnp.asarray(fh_np)
    fwt = jnp.asarray(fwt_np)

    x = outputs.reshape(NC, H, W).astype(jnp.float32)
    y = imgs.reshape(NC, H, W).astype(jnp.float32)

    # Images per grid step: size against the true per-step live set
    # (2 double-buffered inputs, the (B*Ho_pad, 5*W_pad) scratch, ~13 stage-2
    # temporaries of (B*Ho_pad, Wo_pad)), aim for M = B*Ho_pad >= 256 for the
    # MXU, and keep G >= 2 so the parallel grid axis can feed both v7x cores.
    if block_images is None:
        per_img_bytes = (16 * H_pad * W_pad          # x,y blocks, double-buffered
                         + 20 * Ho_pad * W_pad       # stage-1 scratch
                         + 52 * Ho_pad * Wo_pad)     # ~13 stage-2 f32 temporaries
        budget = 12 * 1024 * 1024                    # leave headroom in 32 MiB scoped
        b_fit = max(1, budget // per_img_bytes)
        b_mxu = max(1, -(-256 // Ho_pad))            # B*Ho_pad >= 256
        B = max(1, min(NC, b_fit, b_mxu, 32))        # cap static unroll
        B = max(1, min(B, -(-NC // 2)))              # keep G >= 2 when NC >= 2
    else:
        B = int(block_images)

    pad_imgs = (-NC) % B
    G = (NC + pad_imgs) // B

    xp = jnp.pad(x, ((0, pad_imgs), (0, H_pad - H), (0, W_pad - W)))
    yp = jnp.pad(y, ((0, pad_imgs), (0, H_pad - H), (0, W_pad - W)))

    partial = pl.pallas_call(
        _ssim_kernel,
        out_shape=jax.ShapeDtypeStruct((G, 1, Wo_pad), jnp.float32),
        grid_spec=pltpu.PrefetchScalarGridSpec(
            num_scalar_prefetch=0,
            grid=(G,),
            in_specs=[
                pl.BlockSpec((B, H_pad, W_pad), lambda i: (i, 0, 0)),
                pl.BlockSpec((B, H_pad, W_pad), lambda i: (i, 0, 0)),
                pl.BlockSpec((Ho_pad, H_pad), lambda i: (0, 0)),
                pl.BlockSpec((W_pad, Wo_pad), lambda i: (0, 0)),
            ],
            out_specs=pl.BlockSpec((1, 1, Wo_pad), lambda i: (i, 0, 0)),
            scratch_shapes=[pltpu.VMEM((B * Ho_pad, 5 * W_pad), jnp.float32)],
        ),
        compiler_params=pltpu.CompilerParams(
            dimension_semantics=("parallel",),
            vmem_limit_bytes=32 * 1024 * 1024),
    )(xp, yp, fh, fwt)

    # loss = 1 - mean(ssim) = -mean(ssim - 1); padded positions sum to exactly 0.
    total = jnp.sum(partial)
    return -total / jnp.float32(NC * Ho * Wo)


def ssim_loss_ref(outputs, imgs):
    """Pure-JAX reference with identical math (for validation)."""
    N, Ch, H, W = outputs.shape
    Ho, Wo = H - WIN_SIZE + 1, W - WIN_SIZE + 1
    g = _gaussian_window_1d()
    fh = jnp.asarray(_band_matrix(Ho, H, g))
    fw = jnp.asarray(_band_matrix(Wo, W, g))
    x = outputs.reshape(N * Ch, H, W).astype(jnp.float32)
    y = imgs.reshape(N * Ch, H, W).astype(jnp.float32)

    def gfilt(z):
        return jnp.einsum("oh,nhw,pw->nop", fh, z, fw)

    mu1, mu2 = gfilt(x), gfilt(y)
    mu1_sq, mu2_sq, mu1_mu2 = mu1 * mu1, mu2 * mu2, mu1 * mu2
    sigma1_sq = gfilt(x * x) - mu1_sq
    sigma2_sq = gfilt(y * y) - mu2_sq
    sigma12 = gfilt(x * y) - mu1_mu2
    cs_map = (2.0 * sigma12 + C2) / (sigma1_sq + sigma2_sq + C2)
    ssim_map = ((2.0 * mu1_mu2 + C1) / (mu1_sq + mu2_sq + C1)) * cs_map
    return 1.0 - jnp.mean(ssim_map)


if __name__ == "__main__":
    key = jax.random.PRNGKey(0)
    k1, k2 = jax.random.split(key)
    N, Ch, H, W = 2, 4, 16, 16
    outputs = jax.random.uniform(k1, (N, Ch, H, W), dtype=jnp.float32)
    imgs = jax.random.uniform(k2, (N, Ch, H, W), dtype=jnp.float32)

    loss = jax.block_until_ready(ssim_loss_pallas(outputs, imgs))
    ref = jax.block_until_ready(ssim_loss_ref(outputs, imgs))

    assert np.isfinite(float(loss))
    np.testing.assert_allclose(float(loss), float(ref), rtol=1e-4, atol=1e-5)
    print("KERNEL_OK")
</pallas_src>

<mosaic_0001>
module attributes {stable_mosaic.version = 11 : i64} {
  func.func @_ssim_kernel(%arg0: i32, %arg1: memref<4x16x128xf32, #tpu.memory_space<vmem>>, %arg2: memref<4x16x128xf32, #tpu.memory_space<vmem>>, %arg3: memref<8x16xf32, #tpu.memory_space<vmem>>, %arg4: memref<128x128xf32, #tpu.memory_space<vmem>>, %arg5: memref<1x1x128xf32, #tpu.memory_space<vmem>>, %arg6: memref<32x640xf32, #tpu.memory_space<vmem>>) attributes {dimension_semantics = [#tpu.dimension_semantics<parallel>], iteration_bounds = array<i64: 2>, scalar_prefetch = 0 : i64, scratch_operands = 1 : i64, tpu.core_type = #tpu.core_type<tc>, window_params = [{transform_indices = @transform_0, window_bounds = array<i64: 4, 16, 128>}, {transform_indices = @transform_1, window_bounds = array<i64: 4, 16, 128>}, {pipeline_mode = #tpu.pipeline_mode<synchronous>, transform_indices = @transform_2, window_bounds = array<i64: 8, 16>}, {pipeline_mode = #tpu.pipeline_mode<synchronous>, transform_indices = @transform_3, window_bounds = array<i64: 128, 128>}, {transform_indices = @transform_4, window_bounds = array<i64: 1, 1, 128>}]} {
    %c0 = arith.constant 0 : index
    %c0_0 = arith.constant 0 : index
    %0 = vector.load %arg3[%c0, %c0_0] : memref<8x16xf32, #tpu.memory_space<vmem>>, vector<8x16xf32>
    %c0_1 = arith.constant 0 : index
    %c0_2 = arith.constant 0 : index
    %1 = vector.load %arg4[%c0_1, %c0_2] : memref<128x128xf32, #tpu.memory_space<vmem>>, vector<128x128xf32>
    %c0_3 = arith.constant 0 : index
    %c0_4 = arith.constant 0 : index
    %c0_5 = arith.constant 0 : index
    %2 = vector.load %arg1[%c0_3, %c0_4, %c0_5] : memref<4x16x128xf32, #tpu.memory_space<vmem>>, vector<1x16x128xf32>
    %3 = vector.shape_cast %2 : vector<1x16x128xf32> to vector<16x128xf32>
    %c0_6 = arith.constant 0 : index
    %c0_7 = arith.constant 0 : index
    %c0_8 = arith.constant 0 : index
    %4 = vector.load %arg2[%c0_6, %c0_7, %c0_8] : memref<4x16x128xf32, #tpu.memory_space<vmem>>, vector<1x16x128xf32>
    %5 = vector.shape_cast %4 : vector<1x16x128xf32> to vector<16x128xf32>
    %6 = arith.mulf %3, %3 : vector<16x128xf32>
    %7 = arith.mulf %5, %5 : vector<16x128xf32>
    %8 = arith.mulf %3, %5 : vector<16x128xf32>
    %9 = tpu.concatenate %3, %5, %6, %7, %8 in 1 : vector<16x128xf32>, vector<16x128xf32>, vector<16x128xf32>, vector<16x128xf32>, vector<16x128xf32> -> vector<16x640xf32>
    %cst = arith.constant dense<0.000000e+00> : vector<8x640xf32>
    %10 = tpu.matmul %0, %9, %cst {dimension_numbers = #tpu.dot_dimension_numbers<[1], [0], [0], [1], [0, 0, 1, 1], [], []>} : vector<8x16xf32>, vector<16x640xf32>, vector<8x640xf32> -> vector<8x640xf32>
    %c0_9 = arith.constant 0 : index
    %c0_10 = arith.constant 0 : index
    %11 = vector.load %arg6[%c0_9, %c0_10] : memref<32x640xf32, #tpu.memory_space<vmem>>, vector<8x640xf32>
    tpu.vector_store %arg6[%c0_9, %c0_10], %10 {strides = array<i32>} : memref<32x640xf32, #tpu.memory_space<vmem>>, vector<8x640xf32>,
    %c1 = arith.constant 1 : index
    %c0_11 = arith.constant 0 : index
    %c0_12 = arith.constant 0 : index
    %12 = vector.load %arg1[%c1, %c0_11, %c0_12] : memref<4x16x128xf32, #tpu.memory_space<vmem>>, vector<1x16x128xf32>
    %13 = vector.shape_cast %12 : vector<1x16x128xf32> to vector<16x128xf32>
    %c1_13 = arith.constant 1 : index
    %c0_14 = arith.constant 0 : index
    %c0_15 = arith.constant 0 : index
    %14 = vector.load %arg2[%c1_13, %c0_14, %c0_15] : memref<4x16x128xf32, #tpu.memory_space<vmem>>, vector<1x16x128xf32>
    %15 = vector.shape_cast %14 : vector<1x16x128xf32> to vector<16x128xf32>
    %16 = arith.mulf %13, %13 : vector<16x128xf32>
    %17 = arith.mulf %15, %15 : vector<16x128xf32>
    %18 = arith.mulf %13, %15 : vector<16x128xf32>
    %19 = tpu.concatenate %13, %15, %16, %17, %18 in 1 : vector<16x128xf32>, vector<16x128xf32>, vector<16x128xf32>, vector<16x128xf32>, vector<16x128xf32> -> vector<16x640xf32>
    %cst_16 = arith.constant dense<0.000000e+00> : vector<8x640xf32>
    %20 = tpu.matmul %0, %19, %cst_16 {dimension_numbers = #tpu.dot_dimension_numbers<[1], [0], [0], [1], [0, 0, 1, 1], [], []>} : vector<8x16xf32>, vector<16x640xf32>, vector<8x640xf32> -> vector<8x640xf32>
    %c8 = arith.constant 8 : index
    %c0_17 = arith.constant 0 : index
    %21 = vector.load %arg6[%c8, %c0_17] : memref<32x640xf32, #tpu.memory_space<vmem>>, vector<8x640xf32>
    tpu.vector_store %arg6[%c8, %c0_17], %20 {strides = array<i32>} : memref<32x640xf32, #tpu.memory_space<vmem>>, vector<8x640xf32>,
    %c2 = arith.constant 2 : index
    %c0_18 = arith.constant 0 : index
    %c0_19 = arith.constant 0 : index
    %22 = vector.load %arg1[%c2, %c0_18, %c0_19] : memref<4x16x128xf32, #tpu.memory_space<vmem>>, vector<1x16x128xf32>
    %23 = vector.shape_cast %22 : vector<1x16x128xf32> to vector<16x128xf32>
    %c2_20 = arith.constant 2 : index
    %c0_21 = arith.constant 0 : index
    %c0_22 = arith.constant 0 : index
    %24 = vector.load %arg2[%c2_20, %c0_21, %c0_22] : memref<4x16x128xf32, #tpu.memory_space<vmem>>, vector<1x16x128xf32>
    %25 = vector.shape_cast %24 : vector<1x16x128xf32> to vector<16x128xf32>
    %26 = arith.mulf %23, %23 : vector<16x128xf32>
    %27 = arith.mulf %25, %25 : vector<16x128xf32>
    %28 = arith.mulf %23, %25 : vector<16x128xf32>
    %29 = tpu.concatenate %23, %25, %26, %27, %28 in 1 : vector<16x128xf32>, vector<16x128xf32>, vector<16x128xf32>, vector<16x128xf32>, vector<16x128xf32> -> vector<16x640xf32>
    %cst_23 = arith.constant dense<0.000000e+00> : vector<8x640xf32>
    %30 = tpu.matmul %0, %29, %cst_23 {dimension_numbers = #tpu.dot_dimension_numbers<[1], [0], [0], [1], [0, 0, 1, 1], [], []>} : vector<8x16xf32>, vector<16x640xf32>, vector<8x640xf32> -> vector<8x640xf32>
    %c16 = arith.constant 16 : index
    %c0_24 = arith.constant 0 : index
    %31 = vector.load %arg6[%c16, %c0_24] : memref<32x640xf32, #tpu.memory_space<vmem>>, vector<8x640xf32>
    tpu.vector_store %arg6[%c16, %c0_24], %30 {strides = array<i32>} : memref<32x640xf32, #tpu.memory_space<vmem>>, vector<8x640xf32>,
    %c3 = arith.constant 3 : index
    %c0_25 = arith.constant 0 : index
    %c0_26 = arith.constant 0 : index
    %32 = vector.load %arg1[%c3, %c0_25, %c0_26] : memref<4x16x128xf32, #tpu.memory_space<vmem>>, vector<1x16x128xf32>
    %33 = vector.shape_cast %32 : vector<1x16x128xf32> to vector<16x128xf32>
    %c3_27 = arith.constant 3 : index
    %c0_28 = arith.constant 0 : index
    %c0_29 = arith.constant 0 : index
    %34 = vector.load %arg2[%c3_27, %c0_28, %c0_29] : memref<4x16x128xf32, #tpu.memory_space<vmem>>, vector<1x16x128xf32>
    %35 = vector.shape_cast %34 : vector<1x16x128xf32> to vector<16x128xf32>
    %36 = arith.mulf %33, %33 : vector<16x128xf32>
    %37 = arith.mulf %35, %35 : vector<16x128xf32>
    %38 = arith.mulf %33, %35 : vector<16x128xf32>
    %39 = tpu.concatenate %33, %35, %36, %37, %38 in 1 : vector<16x128xf32>, vector<16x128xf32>, vector<16x128xf32>, vector<16x128xf32>, vector<16x128xf32> -> vector<16x640xf32>
    %cst_30 = arith.constant dense<0.000000e+00> : vector<8x640xf32>
    %40 = tpu.matmul %0, %39, %cst_30 {dimension_numbers = #tpu.dot_dimension_numbers<[1], [0], [0], [1], [0, 0, 1, 1], [], []>} : vector<8x16xf32>, vector<16x640xf32>, vector<8x640xf32> -> vector<8x640xf32>
    %c24 = arith.constant 24 : index
    %c0_31 = arith.constant 0 : index
    %41 = vector.load %arg6[%c24, %c0_31] : memref<32x640xf32, #tpu.memory_space<vmem>>, vector<8x640xf32>
    tpu.vector_store %arg6[%c24, %c0_31], %40 {strides = array<i32>} : memref<32x640xf32, #tpu.memory_space<vmem>>, vector<8x640xf32>,
    %c0_32 = arith.constant 0 : index
    %c0_33 = arith.constant 0 : index
    %42 = vector.load %arg6[%c0_32, %c0_33] : memref<32x640xf32, #tpu.memory_space<vmem>>, vector<32x128xf32>
    %cst_34 = arith.constant dense<0.000000e+00> : vector<32x128xf32>
    %43 = tpu.matmul %42, %1, %cst_34 {dimension_numbers = #tpu.dot_dimension_numbers<[1], [0], [0], [1], [0, 0, 1, 1], [], []>} : vector<32x128xf32>, vector<128x128xf32>, vector<32x128xf32> -> vector<32x128xf32>
    %c0_35 = arith.constant 0 : index
    %c128 = arith.constant 128 : index
    %44 = vector.load %arg6[%c0_35, %c128] : memref<32x640xf32, #tpu.memory_space<vmem>>, vector<32x128xf32>
    %cst_36 = arith.constant dense<0.000000e+00> : vector<32x128xf32>
    %45 = tpu.matmul %44, %1, %cst_36 {dimension_numbers = #tpu.dot_dimension_numbers<[1], [0], [0], [1], [0, 0, 1, 1], [], []>} : vector<32x128xf32>, vector<128x128xf32>, vector<32x128xf32> -> vector<32x128xf32>
    %c0_37 = arith.constant 0 : index
    %c256 = arith.constant 256 : index
    %46 = vector.load %arg6[%c0_37, %c256] : memref<32x640xf32, #tpu.memory_space<vmem>>, vector<32x128xf32>
    %cst_38 = arith.constant dense<0.000000e+00> : vector<32x128xf32>
    %47 = tpu.matmul %46, %1, %cst_38 {dimension_numbers = #tpu.dot_dimension_numbers<[1], [0], [0], [1], [0, 0, 1, 1], [], []>} : vector<32x128xf32>, vector<128x128xf32>, vector<32x128xf32> -> vector<32x128xf32>
    %c0_39 = arith.constant 0 : index
    %c384 = arith.constant 384 : index
    %48 = vector.load %arg6[%c0_39, %c384] : memref<32x640xf32, #tpu.memory_space<vmem>>, vector<32x128xf32>
    %cst_40 = arith.constant dense<0.000000e+00> : vector<32x128xf32>
    %49 = tpu.matmul %48, %1, %cst_40 {dimension_numbers = #tpu.dot_dimension_numbers<[1], [0], [0], [1], [0, 0, 1, 1], [], []>} : vector<32x128xf32>, vector<128x128xf32>, vector<32x128xf32> -> vector<32x128xf32>
    %c0_41 = arith.constant 0 : index
    %c512 = arith.constant 512 : index
    %50 = vector.load %arg6[%c0_41, %c512] : memref<32x640xf32, #tpu.memory_space<vmem>>, vector<32x128xf32>
    %cst_42 = arith.constant dense<0.000000e+00> : vector<32x128xf32>
    %51 = tpu.matmul %50, %1, %cst_42 {dimension_numbers = #tpu.dot_dimension_numbers<[1], [0], [0], [1], [0, 0, 1, 1], [], []>} : vector<32x128xf32>, vector<128x128xf32>, vector<32x128xf32> -> vector<32x128xf32>
    %52 = arith.mulf %43, %43 : vector<32x128xf32>
    %53 = arith.mulf %45, %45 : vector<32x128xf32>
    %54 = arith.mulf %43, %45 : vector<32x128xf32>
    %55 = arith.subf %47, %52 : vector<32x128xf32>
    %56 = arith.subf %49, %53 : vector<32x128xf32>
    %57 = arith.subf %51, %54 : vector<32x128xf32>
    %cst_43 = arith.constant 2.000000e+00 : f32
    %58 = vector.broadcast %cst_43 : f32 to vector<32x128xf32>
    %59 = arith.mulf %58, %54 : vector<32x128xf32>
    %cst_44 = arith.constant 9.99999974E-5 : f32
    %60 = vector.broadcast %cst_44 : f32 to vector<32x128xf32>
    %61 = arith.addf %59, %60 : vector<32x128xf32>
    %cst_45 = arith.constant 2.000000e+00 : f32
    %62 = vector.broadcast %cst_45 : f32 to vector<32x128xf32>
    %63 = arith.mulf %62, %57 : vector<32x128xf32>
    %cst_46 = arith.constant 8.99999984E-4 : f32
    %64 = vector.broadcast %cst_46 : f32 to vector<32x128xf32>
    %65 = arith.addf %63, %64 : vector<32x128xf32>
    %66 = arith.mulf %61, %65 : vector<32x128xf32>
    %67 = arith.addf %52, %53 : vector<32x128xf32>
    %cst_47 = arith.constant 9.99999974E-5 : f32
    %68 = vector.broadcast %cst_47 : f32 to vector<32x128xf32>
    %69 = arith.addf %67, %68 : vector<32x128xf32>
    %70 = arith.addf %55, %56 : vector<32x128xf32>
    %cst_48 = arith.constant 8.99999984E-4 : f32
    %71 = vector.broadcast %cst_48 : f32 to vector<32x128xf32>
    %72 = arith.addf %70, %71 : vector<32x128xf32>
    %73 = arith.mulf %69, %72 : vector<32x128xf32>
    %74 = arith.subf %66, %73 : vector<32x128xf32>
    %75 = arith.divf %74, %73 : vector<32x128xf32>
    %cst_49 = arith.constant dense<0.000000e+00> : vector<128xf32>
    %76 = vector.multi_reduction <add>, %75, %cst_49 [0] : vector<32x128xf32> to vector<128xf32>
    %77 = vector.shape_cast %76 : vector<128xf32> to vector<1x128xf32>
    %78 = vector.shape_cast %77 : vector<1x128xf32> to vector<1x1x128xf32>
    %c0_50 = arith.constant 0 : index
    %c0_51 = arith.constant 0 : index
    %c0_52 = arith.constant 0 : index
    %79 = vector.load %arg5[%c0_50, %c0_51, %c0_52] : memref<1x1x128xf32, #tpu.memory_space<vmem>>, vector<1x1x128xf32>
    tpu.vector_store %arg5[%c0_50, %c0_51, %c0_52], %78 {strides = array<i32>} : memref<1x1x128xf32, #tpu.memory_space<vmem>>, vector<1x1x128xf32>,
    return
  }
  func.func @transform_0(%arg0: i32) -> (i32, i32, i32) {
    %c0_i32 = arith.constant 0 : i32
    %c0_i32_0 = arith.constant 0 : i32
    %c0_i32_1 = arith.constant 0 : i32
    return %arg0, %c0_i32, %c0_i32_0 : i32, i32, i32
  }
  func.func @transform_1(%arg0: i32) -> (i32, i32, i32) {
    %c0_i32 = arith.constant 0 : i32
    %c0_i32_0 = arith.constant 0 : i32
    %c0_i32_1 = arith.constant 0 : i32
    return %arg0, %c0_i32, %c0_i32_0 : i32, i32, i32
  }
  func.func @transform_2(%arg0: i32) -> (i32, i32) {
    %c0_i32 = arith.constant 0 : i32
    %c0_i32_0 = arith.constant 0 : i32
    %c0_i32_1 = arith.constant 0 : i32
    return %c0_i32, %c0_i32_0 : i32, i32
  }
  func.func @transform_3(%arg0: i32) -> (i32, i32) {
    %c0_i32 = arith.constant 0 : i32
    %c0_i32_0 = arith.constant 0 : i32
    %c0_i32_1 = arith.constant 0 : i32
    return %c0_i32, %c0_i32_0 : i32, i32
  }
  func.func @transform_4(%arg0: i32) -> (i32, i32, i32) {
    %c0_i32 = arith.constant 0 : i32
    %c0_i32_0 = arith.constant 0 : i32
    %c0_i32_1 = arith.constant 0 : i32
    return %arg0, %c0_i32, %c0_i32_0 : i32, i32, i32
  }
}

</mosaic_0001>

<bundles_post_ra>
// kernel: tpu_custom_call.1
= control target key start
LH: loop header
LB: loop body
LE: loop exit
PB: predicated region body
PF: predicated region fallthrough
CT: control target
= control target key end

     0   :  { %s3278_s0 = inlined_call_operand.hbm [shape: f32[8,16,128], index: 0, kind: input, shape index: {}]   ;;  %s3279_s1 = inlined_call_operand.hbm [shape: f32[8,16,128], index: 1, kind: input, shape index: {}]   ;;  %s3280_s2 = inlined_call_operand.hbm [shape: f32[8,16], index: 2, kind: input, shape index: {}]   ;;  %s3281_s3 = inlined_call_operand.hbm [shape: f32[128,128], index: 3, kind: input, shape index: {}]   ;;  %s3282_s4 = inlined_call_operand.hbm [shape: f32[2,1,128], index: 4, kind: output, shape index: {}]  }
   0x1   :  { %3289 = sst [smem:[#allocation17_spill]] %s3278_s0 }
   0x2   :  { %9 = vsyncpa [#allocation4], 0 }
   0x3   :  { %11 = vsyncpa [#allocation4 + $0x1], 0 }
   0x4   :  { %12 = vsyncpa [#allocation7], 0 }
   0x5   :  { %14 = vsyncpa [#allocation7 + $0x1], 0 }
   0x6   :  { %15 = vsyncpa [#allocation10], 0 }
   0x7   :  { %16 = vsyncpa [#allocation5], 0 }
   0x8   :  { %18 = vsyncpa [#allocation5 + $0x1], 0  ;;  %s2772_s15 = smov 0   ;;  %s2774_s16 = smov 0  }
   0x9   :  { %s2776_s17 = smov 0   ;;  %s2778_s18 = smov 0  }
   0xa LB: > { %s2793_s19 = sadd.s32 4294967295, %s2735_s18   ;;  %s1873_s20 = sadd.s32 4294967294, %s2735_s18   ;;  %s2735_s18 = sphi %s2778_s18, %s3313_s18   ;;  %s2731_s17 = sphi %s2776_s17, %s3312_s17   ;;  %s2727_s16 = sphi %s2774_s16, %s3311_s16   ;;  %s2723_s15 = sphi %s2772_s15, %s3310_s15  }
   0xb   : > { %s2797_s21 = sadd.s32 1, %s2735_s18   ;;  %s31_s22 = sadd.s32 1, %s2731_s17 }
   0xc   : > { %s28_s23 = ssub.s32 %s2735_s18, %s2797_s21  ;;  %p38_p0 = scmp.ne.s32.totalorder %s2731_s17, %s2727_s16 }
   0xd   : > { %p29_p1 = scmp.eq.s32.totalorder %s28_s23, 0  ;;  %p39_p2 = scmp.eq.s32.totalorder %s2735_s18, 0 }
   0xe   : > { %p44_p3 = scmp.ne.s32.totalorder %s2727_s16, %s2723_s15  ;;  %p3283_p4 = scmp.eq.s32.totalorder %s2793_s19, 0 }
   0xf   : > { %s2809_s24 = scalar_select %p29_p1, %s2731_s17, %s31_s22  }
  0x10   : > { %p2811_p5 = por %p39_p2, %p38_p0  ;;  %p2817_p6 = por %p3283_p4, %p44_p3 }
  0x11   : > { %p136_p7 = scmp.eq.s32.totalorder %s2793_s19, 1  ;;  %p142_p8 = scmp.eq.s32.totalorder %s1873_s20, 1 }
  0x12   : > { %s3291_s26 = scalar_select %p2817_p6, 1, 0 }
  0x13   : > { %p1874_p9 = scmp.ge.s32.totalorder %s2735_s18, 1  ;;  %p149_p10 = scmp.lt.s32.totalorder %s2735_s18, 3 }
  0x14   : > { %p2824_p11 = por %p136_p7, %p38_p0  ;;  %p2828_p12 = por %p142_p8, %p44_p3 }
  0x15   : > { %p2832_p13 = pnand %p1874_p9, %p149_p10  ;;  %s2737_s30 = smov [#allocation8]  }
  0x16   : > { %s3292_s27 = scalar_select %p2824_p11, 1, 0 }
  0x17   : > { %s3293_s28 = scalar_select %p2828_p12, 1, 0 }
  0x18   : > { %s3294_s29 = scalar_select %p2832_p13, 1, 0 }
  0x19   : > { %p2470_p2 = pneg %p2832_p13  ;;  %s162_s5 = sshll.u32 %s2737_s30, 4  ;;  %s163_s5 = int_to_ptr.vmem [resolvable:$true] %s162_s5 }
  0x1a   : > { %p2490_p4 = scmp.lt.s32.totalorder %s2735_s18, 2  ;;  %p3295_p0 = scmp.eq.s32.totalorder %s2793_s19, 0 }
  0x1b   : > { %s2738_s8 = smov [#allocation9]   ;;  %s2541_s12 = scalar_lea.hbm %s3280_s2, 128 }
  0x1c   : > { %p2842_p7 = pnand %p2470_p2, %p3295_p0  ;;  %p2848_p3 = pnand %p2490_p4, %p2811_p5 }
  0x1d   : > { %s172_s9 = sshll.u32 %s2738_s8, 4  ;;  %p2542_p8 = scmp.ne.s32.totalorder %s3280_s2, %s2541_s12  ;;  %s2852_s9 = int_to_ptr.vmem [resolvable:$true] %s172_s9 }
  0x1e   : > { %s3297_s7 = scalar_select %p2848_p3, 1, 0 }
  0x1f   : > { %p2543_p9 = pneg %p2842_p7  ;;  %p2548_p10 = scmp.lt.u32.totalorder %s2541_s12, %s3280_s2 }
  0x21   : > { %p2544_p4 = pnand %p2543_p9, %p2542_p8 }
  0x23   : > { %p2545_p5 = pneg %p2544_p4 }
  0x25   : > { %p2550_p2 = pnand %p2548_p10, %p2545_p5 }
  0x27   : > { %2553 = shalt.err (!%p2550_p2)
}
  0x28   : > { %s2554_s23 = scalar_lea.vmem %s163_s5, 128  ;;  %p2562_p11 = scmp.lt.s32.totalorder %s163_s5, %s163_s5 }
  0x29   : > { %p2555_p0 = scmp.ne.s32.totalorder %s163_s5, %s2554_s23  ;;  %p2563_p6 = scmp.lt.s32.totalorder %s2554_s23, %s2554_s23 }
  0x2b   : > { %p2557_p1 = pnand %p2555_p0, %p2543_p9  ;;  %p2564_p13 = por %p2563_p6, %p2562_p11 }
  0x2d   : > { %p2558_p12 = pneg %p2557_p1 }
  0x2f   : > { %p2565_p3 = pnand %p2564_p13, %p2558_p12 }
  0x31   : > { %2568 = shalt.err (!%p2565_p3)
}
  0x32   : > { %2473 = dma.hbm_to_vmem [thread:$0]  (!%p2842_p7), %s3280_s2, 128, %s163_s5, [#allocation7]  }
  0x33   : > { %s186_s8 = sand.u32 1, %s2731_s17   ;;  %s2569_s12 = scalar_lea.hbm %s3281_s3, 2048 }
  0x34   : > { %p2570_p1 = scmp.ne.s32.totalorder %s3281_s3, %s2569_s12  ;;  %p2576_p12 = scmp.lt.u32.totalorder %s2569_s12, %s3281_s3 }
  0x36   : > { %p2572_p6 = pnand %p2570_p1, %p2543_p9 }
  0x38   : > { %p2573_p11 = pneg %p2572_p6 }
  0x3a   : > { %p2578_p13 = pnand %p2576_p12, %p2573_p11 }
  0x3c   : > { %2581 = shalt.err (!%p2578_p13)
}
  0x3d   : > { %s2582_s5 = scalar_lea.vmem %s2852_s9, 2048  ;;  %p2590_p5 = scmp.lt.s32.totalorder %s2852_s9, %s2852_s9 }
  0x3e   : > { %p2583_p3 = scmp.ne.s32.totalorder %s2852_s9, %s2582_s5  ;;  %p2591_p10 = scmp.lt.s32.totalorder %s2582_s5, %s2582_s5 }
  0x40   : > { %p2585_p8 = pnand %p2583_p3, %p2543_p9  ;;  %p2592_p2 = por %p2591_p10, %p2590_p5 }
  0x42   : > { %p2586_p4 = pneg %p2585_p8 }
  0x44   : > { %p2593_p0 = pnand %p2592_p2, %p2586_p4 }
  0x46   : > { %2596 = shalt.err (!%p2593_p0)
}
  0x47   : > { %s2739_s23 = smov 128   ;;  %s2740_s25 = smov 8  }
  0x48   : > { %2476 = dma.hbm_to_vmem [thread:$0]  (!%p2842_p7), %s3281_s3, 2048, %s2852_s9, [#allocation10], %s2739_s23, %s2739_s23, %s2740_s25  }
  0x49   : > { %s2905_s11 = sshll.u32 %s186_s8, 6  ;;  %s3288_s12 = sshll.u32 %s2735_s18, 10 }
  0x4a   : > { %s3298_s0 = sld [smem:[#allocation17_spill]]  ;;  %s190_s6 = scalar_lea.vmem [#allocation3], %s2905_s11 }
  0x4b   : > { %s198_s22 = sshll.u32 %s190_s6, 4  ;;  %s2918_s5 = scalar_lea.sflag [#allocation4], %s186_s8  ;;  %s2916_s22 = int_to_ptr.vmem [resolvable:$true] %s198_s22 }
  0x4c   : > { %p3299_p9 = scmp.ne.s32.totalorder %s3297_s7, 0 }
  0x4e   : > { %p2599_p1 = pneg %p3299_p9 }
  0x50   : > { %s2913_s20 = scalar_lea.hbm %s3298_s0, %s3288_s12  ;;  %s2602_s13 = scalar_lea.hbm %s3298_s0, 2048 }
  0x51   : > { %s2597_s9 = scalar_lea.hbm %s2913_s20, 1024  ;;  %p2603_p12 = scmp.lt.u32.totalorder %s2913_s20, %s3298_s0 }
  0x52   : > { %p2598_p7 = scmp.ne.s32.totalorder %s2913_s20, %s2597_s9  ;;  %p2604_p13 = scmp.lt.u32.totalorder %s2602_s13, %s2597_s9 }
  0x53   : > { %p2606_p8 = scmp.lt.u32.totalorder %s2597_s9, %s2913_s20 }
  0x54   : > { %p2600_p6 = pnand %p2599_p1, %p2598_p7  ;;  %p2605_p3 = por %p2604_p13, %p2603_p12 }
  0x56   : > { %p2601_p11 = pneg %p2600_p6  ;;  %p2607_p4 = por %p2606_p8, %p2605_p3 }
  0x58   : > { %p2608_p5 = pnand %p2607_p4, %p2601_p11 }
  0x5a   : > { %2611 = shalt.err (!%p2608_p5)
}
  0x5b   : > { %s2612_s8 = scalar_lea.vmem %s2916_s22, 1024  ;;  %s2741_s6 = smov [#allocation3]  }
  0x5c   : > { %p2613_p10 = scmp.ne.s32.totalorder %s2916_s22, %s2612_s8  ;;  %s2617_s30 = sshll.u32 %s2741_s6, 4  ;;  %s2618_s30 = int_to_ptr.vmem [resolvable:$false] %s2617_s30 }
  0x5d   : > { %s2619_s12 = scalar_lea.vmem %s2618_s30, 2048  ;;  %p2620_p7 = scmp.lt.s32.totalorder %s2916_s22, %s2618_s30 }
  0x5e   : > { %p2615_p2 = pnand %p2613_p10, %p2599_p1  ;;  %p2621_p6 = scmp.lt.s32.totalorder %s2619_s12, %s2612_s8 }
  0x60   : > { %p2616_p0 = pneg %p2615_p2  ;;  %p2622_p12 = por %p2621_p6, %p2620_p7 }
  0x62   : > { %p2623_p13 = pnand %p2622_p12, %p2616_p0 }
  0x64   : > { %2626 = shalt.err (!%p2623_p13)
}
  0x65   : > { %2480 = dma.hbm_to_vmem [thread:$0]  (!%p3299_p9), %s2913_s20, 1024, %s2916_s22, %s2918_s5, %s2739_s23, %s2739_s23, %s2740_s25  }
  0x66   : > { %s3300_s9 = sshll.u32 %s2735_s18, 10  ;;  %s212_s8 = scalar_lea.vmem [#allocation6], %s2905_s11 }
  0x67   : > { %s2954_s14 = scalar_lea.hbm %s3279_s1, %s3300_s9  ;;  %s220_s6 = sshll.u32 %s212_s8, 4  ;;  %s2957_s6 = int_to_ptr.vmem [resolvable:$true] %s220_s6 }
  0x68   : > { %s208_s30 = sand.u32 1, %s2735_s18   ;;  %s2627_s0 = scalar_lea.hbm %s2954_s14, 1024 }
  0x69   : > { %s2960_s12 = scalar_lea.sflag [#allocation7], %s208_s30  ;;  %p2628_p11 = scmp.ne.s32.totalorder %s2954_s14, %s2627_s0 }
  0x6a   : > { %s2632_s5 = scalar_lea.hbm %s3279_s1, 2048  ;;  %p2633_p4 = scmp.lt.u32.totalorder %s2954_s14, %s3279_s1 }
  0x6b   : > { %p2630_p3 = pnand %p2628_p11, %p2599_p1  ;;  %p2634_p5 = scmp.lt.u32.totalorder %s2632_s5, %s2627_s0 }
  0x6c   : > { %p2636_p2 = scmp.lt.u32.totalorder %s2627_s0, %s2954_s14 }
  0x6d   : > { %p2631_p8 = pneg %p2630_p3  ;;  %p2635_p10 = por %p2634_p5, %p2633_p4 }
  0x6f   : > { %p2637_p0 = por %p2636_p2, %p2635_p10 }
  0x71   : > { %p2638_p7 = pnand %p2637_p0, %p2631_p8 }
  0x73   : > { %2641 = shalt.err (!%p2638_p7)
}
  0x74   : > { %s2642_s11 = scalar_lea.vmem %s2957_s6, 1024  ;;  %s2742_s13 = smov [#allocation6]  }
  0x75   : > { %p2643_p6 = scmp.ne.s32.totalorder %s2957_s6, %s2642_s11  ;;  %s2647_s8 = sshll.u32 %s2742_s13, 4  ;;  %s2648_s8 = int_to_ptr.vmem [resolvable:$false] %s2647_s8 }
  0x76   : > { %s2649_s30 = scalar_lea.vmem %s2648_s8, 2048  ;;  %p2650_p11 = scmp.lt.s32.totalorder %s2957_s6, %s2648_s8 }
  0x77   : > { %p2645_p12 = pnand %p2643_p6, %p2599_p1  ;;  %p2651_p3 = scmp.lt.s32.totalorder %s2649_s30, %s2642_s11 }
  0x79   : > { %p2646_p13 = pneg %p2645_p12  ;;  %p2652_p4 = por %p2651_p3, %p2650_p11 }
  0x7b   : > { %p2653_p5 = pnand %p2652_p4, %p2646_p13 }
  0x7d   : > { %2656 = shalt.err (!%p2653_p5)
}
  0x7e   : > { %2483 = dma.hbm_to_vmem [thread:$0]  (!%p3299_p9), %s2954_s14, 1024, %s2957_s6, %s2960_s12, %s2739_s23, %s2739_s23, %s2740_s25  }
  0x7f   : > { %p3301_p1 = scmp.ne.s32.totalorder %s3294_s29, 0 }
  0x80   : > { %s2992_s0 = sand.u32 (!%p3301_p1), 1, %s2727_s16   ;;  %p3302_p8 = scmp.ne.s32.totalorder (!%p3301_p1), %s3291_s26, 0 }
  0x81   : > { %232 = sbr.rel (%p3301_p1) target bundleno = 701 (0x2bd), region = 36  ;;  %s1887_s20 = sshll.u32 (!%p3301_p1), %s2992_s0, 6 }
  0x82   : > { %s235_s22 = scalar_lea.sflag (!%p3301_p1), [#allocation4], %s2992_s0  ;;  %s2996_s5 = scalar_lea.vmem (!%p3301_p1), [#allocation3], %s1887_s20 }
  0x88   : > { %2702 = dma.done.wait (%p3302_p8), %s235_s22, 1024  }
  0x89   : > { %2704 = vsyncadd (%p3302_p8), %s235_s22, 4294966272  ;;  %s243_s7 = sand.u32 1, %s2793_s19   ;;  %s3003_s23 = scalar_lea.vmem [#allocation6], %s1887_s20 }
  0x8a   : > { %s244_s29 = scalar_lea.sflag [#allocation7], %s243_s7 }
  0x8b   : > { %2706 = dma.done.wait (%p3302_p8), %s244_s29, 1024  }
  0x8c   : > { %2708 = vsyncadd (%p3302_p8), %s244_s29, 4294966272  ;;  %p3303_p9 = scmp.eq.s32.totalorder %s2793_s19, 0 }
  0x8e   : > { %2710 = dma.done.wait (%p3303_p9), [#allocation7], 128   ;;  %p3304_p10 = pmov %p3303_p9 }
  0x8f   : > { %p3305_p2 = pmov %p3303_p9 }
  0x90   : > { %2712 = vsyncadd (%p3304_p10), [#allocation7], 4294967168 }
  0x91   : > { %2714 = dma.done.wait (%p3305_p2), [#allocation10], 2048   ;;  %p3306_p0 = pmov %p3305_p2 }
  0x92   : > { %v2743_v0 = vmov 0.0   ;;  %v2744_v1 = vmov 0.0|0.0   ;;  %vm2745_vm0 = vmmov 0   ;;  %v305_v2 = vld [vmem:[%s3003_s23] sm:$0xff]  ;;  %v306_v3 = vld [vmem:[%s3003_s23 + $0x8] sm:$0xff]  ;;  %vm313_vm1 = vcmask 130048  }
  0x93   : > { %2716 = vsyncadd (%p3306_p0), [#allocation10], 4294965248  ;;  %381 = vmatprep.mubr.f32.mxu1 %v2743_v0  ;;  %2282 = vmatprep.subr.bf16.mxu0 %v2744_v1  ;;  %v303_v4 = vld [vmem:[%s2996_s5] sm:$0xff]  ;;  %v309_v5 = vmul.f32 %v305_v2, %v305_v2  ;;  %v310_v6 = vmul.f32 %v306_v3, %v306_v3  ;;  %v2252_v7 = vpack.c.bf16 %v306_v3, %v305_v2  ;;  %v304_v8 = vld [vmem:[%s2996_s5 + $0x8] sm:$0xff]  ;;  %s1915_s26 = sshll.u32 %s2793_s19, 4  ;;  %s283_s25 = scalar_lea.vmem [#allocation11], %s2992_s0 }
  0x94   : > { %2052 = vmatprep.mubr.msk.f32.mxu0 %vm2745_vm0, %v2743_v0  ;;  %v307_v9 = vmul.f32 %v303_v4, %v303_v4  ;;  %v308_v10 = vmul.f32 %v304_v8, %v304_v8  ;;  %v2254_v11 = vpack.c.bf16 %v304_v8, %v303_v4  ;;  %v311_v13 = vmul.f32 %v305_v2, %v303_v4  ;;  %v3025_v15 = vld [vmem:[#allocation8] sm:$0xff]  ;;  %v1896_v17 = vld [vmem:[%s3003_s23 + $0x10] sm:$0xff]  ;;  %v1897_v18 = vld [vmem:[%s3003_s23 + $0x18] sm:$0xff]  ;;  %s1765_s14 = sshll.u32 %s283_s25, 4  ;;  %s3234_s9 = scalar_lea.hbm %s3282_s4, %s1915_s26  ;;  %s3236_s14 = int_to_ptr.vmem [resolvable:$true] %s1765_s14 }
  0x95   : > { %2253 = vmatprep.subr.bf16.mxu1 %v2252_v7  ;;  %v2256_v12 = vpack.c.bf16 %v310_v6, %v309_v5  ;;  %v312_v14 = vmul.f32 %v306_v3, %v304_v8  ;;  %v1894_v19 = vld [vmem:[%s2996_s5 + $0x10] sm:$0xff]  ;;  %v1895_v20 = vld [vmem:[%s2996_s5 + $0x18] sm:$0xff]  ;;  %v3034_v21 = vld [vmem:[%s3003_s23 + $0x20] sm:$0xff]  ;;  %v2263_v26 = vpack.c.bf16 %v1897_v18, %v1896_v17  ;;  %v542_v27 = vmul.f32 %v1896_v17, %v1896_v17  ;;  %s1753_s10 = scalar_lea.sflag [#allocation5], %s2992_s0  ;;  %s2657_s11 = scalar_lea.vmem %s3236_s14, 16 }
  0x96   : > { %2255 = vmatpush1.bf16.msra.mxu1 %v2254_v11  ;;  %v2258_v16 = vpack.c.bf16 %v308_v10, %v307_v9  ;;  %v3038_v23 = vld [vmem:[%s3003_s23 + $0x28] sm:$0xff]  ;;  %v3041_v24 = vld [vmem:[%s2996_s5 + $0x20] sm:$0xff]  ;;  %v543_v28 = vmul.f32 %v1897_v18, %v1897_v18  ;;  %v3048_v29 = vld [vmem:[%s2996_s5 + $0x30] sm:$0xff]  ;;  %v2265_v38 = vpack.c.bf16 %v1895_v20, %v1894_v19  ;;  %v540_v39 = vmul.f32 %v1894_v19, %v1894_v19  ;;  %p2658_p7 = scmp.ne.s32.totalorder %s3236_s14, %s2657_s11  ;;  %p3307_p6 = scmp.ne.s32.totalorder %s3292_s27, 0 }
  0x97   : > { %2257 = vmatprep.subr.bf16.mxu1 %v2256_v12  ;;  %v2261_v22 = vpack.c.bf16 %v312_v14, %v311_v13  ;;  %v3044_v25 = vld [vmem:[%s2996_s5 + $0x28] sm:$0xff]  ;;  %v3051_v30 = vld [vmem:[%s3003_s23 + $0x30] sm:$0xff]  ;;  %v3054_v31 = vld [vmem:[%s3003_s23 + $0x38] sm:$0xff]  ;;  %v773_v32 = vmul.f32 %v3034_v21, %v3041_v24  ;;  %v998_v37 = vmul.f32 %v3048_v29, %v3048_v29  ;;  %v541_v41 = vmul.f32 %v1895_v20, %v1895_v20  ;;  %s2746_s19 = smov [#allocation11]  }
  0x98   : > { %v3059_v33 = vld [vmem:[%s2996_s5 + $0x38] sm:$0xff]  ;;  %v774_v34 = vmul.f32 %v3038_v23, %v3044_v25  ;;  %v1000_v35 = vmul.f32 %v3051_v30, %v3051_v30  ;;  %v1001_v36 = vmul.f32 %v3054_v31, %v3054_v31  ;;  %v287_v44 = vld [vmem:[#allocation9] sm:$0xff]  ;;  %v288_v45 = vld [vmem:[#allocation9 + $0x8] sm:$0xff]  ;;  %v2267_v46 = vpack.c.bf16 %v543_v28, %v542_v27  ;;  %p2659_p12 = pnand %p2658_p7, %p3307_p6  ;;  %s2661_s13 = sshll.u32 %s2746_s19, 4  ;;  %s2662_s13 = int_to_ptr.vmem [resolvable:$false] %s2661_s13 }
  0x99   : > { %1891 = vmatmul.mubr.msk.f32.vlgmr.msra.gmra.mrb[0].mxu1 %vm313_vm1, %v3025_v15  ;;  %v999_v40 = vmul.f32 %v3059_v33, %v3059_v33  ;;  %v3077_v48 = vpack.c.bf16 %v288_v45, %v287_v44  ;;  %v544_v49 = vmul.f32 %v1896_v17, %v1894_v19  ;;  %v545_v50 = vmul.f32 %v1897_v18, %v1895_v20  ;;  %v289_v52 = vld [vmem:[#allocation9 + $0x10] sm:$0xff]  ;;  %v290_v53 = vld [vmem:[#allocation9 + $0x18] sm:$0xff]  ;;  %v291_v56 = vld [vmem:[#allocation9 + $0x20] sm:$0xff]  ;;  %s2663_s8 = scalar_lea.vmem %s2662_s13, 32  ;;  %p2664_p11 = scmp.lt.s32.totalorder %s3236_s14, %s2662_s13 }
  0x9a   : > { %2259 = vmatpush1.bf16.msra.mxu1 %v2258_v16  ;;  %452 = vmatprep.mubr.f32.mxu1 %v2743_v0  ;;  %v2283_v42 = vpack.c.bf16 %v774_v34, %v773_v32  ;;  %v2289_v43 = vpack.c.bf16 %v1001_v36, %v1000_v35  ;;  %v2269_v51 = vpack.c.bf16 %v541_v41, %v540_v39  ;;  %v292_v57 = vld [vmem:[#allocation9 + $0x28] sm:$0xff]  ;;  %v293_v3 = vld [vmem:[#allocation9 + $0x30] sm:$0xff]  ;;  %v294_v4 = vld [vmem:[#allocation9 + $0x38] sm:$0xff]  ;;  %p2660_p13 = pneg %p2659_p12  ;;  %p2665_p3 = scmp.lt.s32.totalorder %s2663_s8, %s2657_s11 }
  0x9b   : > { %2260 = vmatprep.subr.bf16.mxu1 %v2744_v1  ;;  %v2291_v47 = vpack.c.bf16 %v999_v40, %v998_v37  ;;  %v3086_v54 = vpack.c.bf16 %v290_v53, %v289_v52  ;;  %v2272_v55 = vpack.c.bf16 %v545_v50, %v544_v49  ;;  %v2274_v58 = vpack.c.bf16 %v3038_v23, %v3034_v21  ;;  %v295_v8 = vld [vmem:[#allocation9 + $0x40] sm:$0xff]  ;;  %v296_v9 = vld [vmem:[#allocation9 + $0x48] sm:$0xff]  ;;  %v301_v20 = vld [vmem:[#allocation9 + $0x70] sm:$0xff] }
  0x9c   : > { %2284 = vmatpush3.bf16.msra.mxu0 %v2283_v42  ;;  %v771_v59 = vmul.f32 %v3034_v21, %v3034_v21  ;;  %v772_v60 = vmul.f32 %v3038_v23, %v3038_v23  ;;  %v3102_v61 = vpack.c.bf16 %v292_v57, %v291_v56  ;;  %v2276_v62 = vpack.c.bf16 %v3044_v25, %v3041_v24  ;;  %v299_v17 = vld [vmem:[#allocation9 + $0x60] sm:$0xff]  ;;  %v300_v18 = vld [vmem:[#allocation9 + $0x68] sm:$0xff]  ;;  %v302_v21 = vld [vmem:[#allocation9 + $0x78] sm:$0xff]  ;;  %p2666_p4 = por %p2665_p3, %p2664_p11 }
  0x9d   : > { %1892 = vmatmul.mubr.msk.f32.vlgmr.msra.gmra.mrb[2].mxu1 %vm313_vm1, %v3025_v15  ;;  %2290 = vmatprep.subr.bf16.mxu0 %v2289_v43  ;;  %v769_v63 = vmul.f32 %v3041_v24, %v3041_v24  ;;  %v770_v2 = vmul.f32 %v3044_v25, %v3044_v25  ;;  %v3116_v6 = vpack.c.bf16 %v294_v4, %v293_v3 }
  0x9e   : > { %2262 = vmatpush3.bf16.msra.mxu1 %v2261_v22  ;;  %2038 = vmatprep.mubr.msk.f32.mxu1 %vm2745_vm0, %v2743_v0  ;;  %v2278_v5 = vpack.c.bf16 %v772_v60, %v771_v59  ;;  %v2285_v10 = vpack.c.bf16 %v3054_v31, %v3051_v30  ;;  %v3125_v11 = vpack.c.bf16 %v296_v9, %v295_v8  ;;  %p2667_p5 = pnand %p2666_p4, %p2660_p13 }
  0x9f   : > { %2264 = vmatprep.subr.bf16.mxu1 %v2263_v26  ;;  %2053 = vmatmul.mubr.msk.f32.vlgmr.msra.gmra.mrb[0].mxu0 %vm313_vm1, %v3025_v15  ;;  %v2280_v7 = vpack.c.bf16 %v770_v2, %v769_v63  ;;  %v1002_v12 = vmul.f32 %v3051_v30, %v3048_v29  ;;  %v1003_v13 = vmul.f32 %v3054_v31, %v3059_v33 }
  0xa0   : > { %2292 = vmatpush1.bf16.msra.mxu0 %v2291_v47  ;;  %1139 = vmatprep.mubr.f32.mxu0 %v2743_v0  ;;  %v2287_v14 = vpack.c.bf16 %v3059_v33, %v3048_v29  ;;  %v3163_v19 = vpack.c.bf16 %v300_v18, %v299_v17  ;;  %v3169_v22 = vpack.c.bf16 %v302_v21, %v301_v20 }
  0xa1   : > { %2039 = vmatmul.mubr.msk.f32.vlgmr.msra.gmra.mrb[4].mxu1 %vm313_vm1, %v3025_v15  ;;  %2297 = vmatprep.subr.bf16.mxu0 %v3077_v48  ;;  %v2294_v16 = vpack.c.bf16 %v1003_v13, %v1002_v12 }
  0xa2   : > { %2266 = vmatpush1.bf16.msra.mxu1 %v2265_v38  ;;  %610 = vmatprep.mubr.f32.mxu1 %v2743_v0 }
  0xa3   : > { %2268 = vmatprep.subr.bf16.mxu1 %v2267_v46  ;;  %1913 = vmatmul.mubr.msk.f32.vlgmr.msra.gmra.mrb[2].mxu0 %vm313_vm1, %v3025_v15 }
  0xa4   : > { %2299 = vmatpush3.bf16.msra.mxu0 %v3077_v48 }
  0xa5   : > { %1898 = vmatmul.mubr.msk.f32.vlgmr.msra.gmra.mrb[6].mxu1 %vm313_vm1, %v3025_v15  ;;  %2301 = vmatprep.subr.bf16.mxu0 %v3086_v54 }
  0xa6   : > { %2270 = vmatpush1.bf16.msra.mxu1 %v2269_v51  ;;  %681 = vmatprep.mubr.f32.mxu1 %v2743_v0 }
  0xa7   : > { %2271 = vmatprep.subr.bf16.mxu1 %v2744_v1 }
  0xa8   : > { %2303 = vmatpush3.bf16.msra.mxu0 %v3086_v54 }
  0xa9   : > { %1899 = vmatmul.mubr.msk.f32.vlgmr.msra.gmra.mrb[8].mxu1 %vm313_vm1, %v3025_v15  ;;  %2305 = vmatprep.subr.bf16.mxu0 %v3102_v61 }
  0xaa   : > { %2273 = vmatpush3.bf16.msra.mxu1 %v2272_v55  ;;  %2045 = vmatprep.mubr.msk.f32.mxu1 %vm2745_vm0, %v2743_v0 }
  0xab   : > { %2275 = vmatprep.subr.bf16.mxu1 %v2274_v58 }
  0xac   : > { %2307 = vmatpush3.bf16.msra.mxu0 %v3102_v61 }
  0xad   : > { %2046 = vmatmul.mubr.msk.f32.vlgmr.msra.gmra.mrb[10].mxu1 %vm313_vm1, %v3025_v15  ;;  %2309 = vmatprep.subr.bf16.mxu0 %v3116_v6 }
  0xae   : > { %2277 = vmatpush1.bf16.msra.mxu1 %v2276_v62  ;;  %839 = vmatprep.mubr.f32.mxu1 %v2743_v0 }
  0xaf   : > { %2279 = vmatprep.subr.bf16.mxu1 %v2278_v5 }
  0xb0   : > { %2311 = vmatpush3.bf16.msra.mxu0 %v3116_v6 }
  0xb1   : > { %1905 = vmatmul.mubr.msk.f32.vlgmr.msra.gmra.mrb[12].mxu1 %vm313_vm1, %v3025_v15  ;;  %2313 = vmatprep.subr.bf16.mxu0 %v3125_v11 }
  0xb2   : > { %2281 = vmatpush1.bf16.msra.mxu1 %v2280_v7  ;;  %910 = vmatprep.mubr.f32.mxu1 %v2743_v0 }
  0xb3   : > { %2286 = vmatprep.subr.bf16.mxu1 %v2285_v10 }
  0xb4   : > { %2315 = vmatpush3.bf16.msra.mxu0 %v3125_v11 }
  0xb5   : > { %1906 = vmatmul.mubr.msk.f32.vlgmr.msra.gmra.mrb[14].mxu1 %vm313_vm1, %v3025_v15 }
  0xb6   : > { %2288 = vmatpush1.bf16.msra.mxu1 %v2287_v14  ;;  %1068 = vmatprep.mubr.f32.mxu1 %v2743_v0 }
  0xb7   : > { %2293 = vmatprep.subr.bf16.mxu1 %v2744_v1  ;;  %v298_v1 = vld [vmem:[#allocation9 + $0x58] sm:$0xff] }
  0xb9   : > { %1912 = vmatmul.mubr.msk.f32.vlgmr.msra.gmra.mrb[16].mxu1 %vm313_vm1, %v3025_v15 }
  0xba   : > { %2295 = vmatpush3.bf16.msra.mxu1 %v2294_v16  ;;  %2059 = vmatprep.mubr.msk.f32.mxu1 %vm2745_vm0, %v2743_v0  ;;  %v297_v0 = vld [vmem:[#allocation9 + $0x50] sm:$0xff] }
  0xbb   : > { %2329 = vmatprep.subr.bf16.mxu1 %v3077_v48 }
  0xbd   : > { %2060 = vmatmul.mubr.msk.f32.vlgmr.msra.gmra.mrb[18].mxu1 %vm313_vm1, %v3025_v15  ;;  %v3157_v15 = vpack.c.bf16 %v298_v1, %v297_v0 }
  0xbe   : > { %2331 = vmatpush3.bf16.msra.mxu1 %v3077_v48 }
  0xbf   : > { %2333 = vmatprep.subr.bf16.mxu1 %v3086_v54  ;;  %2317 = vmatprep.subr.bf16.mxu0 %v3157_v15 }
  0xc0   : > { %2319 = vmatpush3.bf16.msra.mxu0 %v3157_v15 }
  0xc1   : > { %2321 = vmatprep.subr.bf16.mxu0 %v3163_v19 }
  0xc2   : > { %2335 = vmatpush3.bf16.msra.mxu1 %v3086_v54 }
  0xc3   : > { %2337 = vmatprep.subr.bf16.mxu1 %v3102_v61 }
  0xc4   : > { %2323 = vmatpush3.bf16.msra.mxu0 %v3163_v19 }
  0xc5   : > { %2325 = vmatprep.subr.bf16.mxu0 %v3169_v22 }
  0xc6   : > { %2339 = vmatpush3.bf16.msra.mxu1 %v3102_v61 }
  0xc7   : > { %2341 = vmatprep.subr.bf16.mxu1 %v3116_v6 }
  0xc8   : > { %2327 = vmatpush3.bf16.msra.mxu0 %v3169_v22 }
  0xc9   : > { %2361 = vmatprep.subr.bf16.mxu0 %v3077_v48 }
  0xca   : > { %2343 = vmatpush3.bf16.msra.mxu1 %v3116_v6 }
  0xcb   : > { %2345 = vmatprep.subr.bf16.mxu1 %v3125_v11 }
  0xce   : > { %2347 = vmatpush3.bf16.msra.mxu1 %v3125_v11 }
  0xcf   : > { %2349 = vmatprep.subr.bf16.mxu1 %v3157_v15 }
  0xd2   : > { %2351 = vmatpush3.bf16.msra.mxu1 %v3157_v15 }
  0xd3   : > { %2353 = vmatprep.subr.bf16.mxu1 %v3163_v19 }
  0xd6   : > { %2355 = vmatpush3.bf16.msra.mxu1 %v3163_v19 }
  0xd7   : > { %2357 = vmatprep.subr.bf16.mxu1 %v3169_v22 }
  0xda   : > { %2359 = vmatpush3.bf16.msra.mxu1 %v3169_v22 }
  0xdb   : > { %2393 = vmatprep.subr.bf16.mxu1 %v3077_v48 }
 0x16c   : > { %v383_v23 = vpop.f32.mrb[0].mxu1 }
 0x16d   : > { %v385_v24 = vpop.f32.mrb[1].mxu1  ;;  %2094 = vmatprep.mubr.f32.mxu0 %v383_v23 }
 0x16e   : > { %2132 = vmatprep.mubr.f32.mxu1 %v385_v24 }
 0x170   : > { %v454_v25 = vpop.f32.mrb[2].mxu1 }
 0x171   : > { %v456_v26 = vpop.f32.mrb[3].mxu1 }
 0x172   : > { %v3179_v29 = vpop.f32.mrb[0].mxu0 }
 0x173   : > { %v2054_v30 = vpop.f32.mrb[1].mxu0 }
 0x174   : > { %v3177_v27 = vpop.f32.mrb[4].mxu1 }
 0x175   : > { %v2040_v28 = vpop.f32.mrb[5].mxu1 }
 0x176   : > { %v1141_v33 = vpop.f32.mrb[2].mxu0 }
 0x177   : > { %v1143_v34 = vpop.f32.mrb[3].mxu0 }
 0x178   : > { %v612_v31 = vpop.f32.mrb[6].mxu1 }
 0x179   : > { %v614_v32 = vpop.f32.mrb[7].mxu1  ;;  %2095 = vmatmul.mubr.f32.vlgmr.msra.gmra.mrb[4].mxu0 %v612_v31 }
 0x17a   : > { %2363 = vmatpush3.bf16.msra.mxu0 %v3077_v48  ;;  %2133 = vmatmul.mubr.f32.vlgmr.msra.gmra.mrb[20].mxu1 %v614_v32 }
 0x17b   : > { %2395 = vmatpush3.bf16.msra.mxu1 %v3077_v48  ;;  %2365 = vmatprep.subr.bf16.mxu0 %v3086_v54 }
 0x17c   : > { %2397 = vmatprep.subr.bf16.mxu1 %v3086_v54  ;;  %v683_v35 = vpop.f32.mrb[8].mxu1 }
 0x17d   : > { %v685_v36 = vpop.f32.mrb[9].mxu1 }
 0x17e   : > { %2367 = vmatpush3.bf16.msra.mxu0 %v3086_v54 }
 0x17f   : > { %2399 = vmatpush3.bf16.msra.mxu1 %v3086_v54  ;;  %2369 = vmatprep.subr.bf16.mxu0 %v3102_v61 }
 0x180   : > { %2401 = vmatprep.subr.bf16.mxu1 %v3102_v61  ;;  %v754_v37 = vpop.f32.mrb[10].mxu1 }
 0x181   : > { %v2047_v38 = vpop.f32.mrb[11].mxu1 }
 0x182   : > { %2371 = vmatpush3.bf16.msra.mxu0 %v3102_v61 }
 0x183   : > { %2403 = vmatpush3.bf16.msra.mxu1 %v3102_v61  ;;  %2373 = vmatprep.subr.bf16.mxu0 %v3116_v6 }
 0x184   : > { %2405 = vmatprep.subr.bf16.mxu1 %v3116_v6  ;;  %v841_v39 = vpop.f32.mrb[12].mxu1 }
 0x185   : > { %v843_v40 = vpop.f32.mrb[13].mxu1  ;;  %2097 = vmatprep.mubr.f32.mxu0 %v841_v39 }
 0x186   : > { %2375 = vmatpush3.bf16.msra.mxu0 %v3116_v6  ;;  %2135 = vmatprep.mubr.f32.mxu1 %v843_v40 }
 0x187   : > { %2407 = vmatpush3.bf16.msra.mxu1 %v3116_v6  ;;  %2377 = vmatprep.subr.bf16.mxu0 %v3125_v11 }
 0x188   : > { %2409 = vmatprep.subr.bf16.mxu1 %v3125_v11  ;;  %v912_v41 = vpop.f32.mrb[14].mxu1 }
 0x189   : > { %v914_v42 = vpop.f32.mrb[15].mxu1 }
 0x18a   : > { %2379 = vmatpush3.bf16.msra.mxu0 %v3125_v11 }
 0x18b   : > { %2411 = vmatpush3.bf16.msra.mxu1 %v3125_v11  ;;  %2381 = vmatprep.subr.bf16.mxu0 %v3157_v15 }
 0x18c   : > { %v1070_v43 = vpop.f32.mrb[16].mxu1  ;;  %2413 = vmatprep.subr.bf16.mxu1 %v3157_v15 }
 0x18d   : > { %v1072_v44 = vpop.f32.mrb[17].mxu1  ;;  %2098 = vmatmul.mubr.f32.gmra.mrb[6].mxu0 %v1070_v43 }
 0x18e   : > { %2383 = vmatpush3.bf16.msra.mxu0 %v3157_v15  ;;  %2136 = vmatmul.mubr.f32.gmra.mrb[22].mxu1 %v1072_v44 }
 0x18f   : > { %2170 = vmatprep.mubr.f32.mxu0 %v454_v25  ;;  %2415 = vmatpush3.bf16.msra.mxu1 %v3157_v15 }
 0x190   : > { %2208 = vmatprep.mubr.f32.mxu1 %v456_v26  ;;  %2385 = vmatprep.subr.bf16.mxu0 %v3163_v19  ;;  %v1212_v45 = vpop.f32.mrb[18].mxu1 }
 0x191   : > { %2417 = vmatprep.subr.bf16.mxu1 %v3163_v19  ;;  %v2061_v46 = vpop.f32.mrb[19].mxu1 }
 0x192   : > { %2387 = vmatpush3.bf16.msra.mxu0 %v3163_v19 }
 0x193   : > { %2419 = vmatpush3.bf16.msra.mxu1 %v3163_v19  ;;  %2389 = vmatprep.subr.bf16.mxu0 %v3169_v22 }
 0x194   : > { %2421 = vmatprep.subr.bf16.mxu1 %v3169_v22 }
 0x196   : > { %2391 = vmatpush3.bf16.msra.mxu0 %v3169_v22 }
 0x197   : > { %2423 = vmatpush3.bf16.msra.mxu1 %v3169_v22  ;;  %2425 = vmatprep.subr.bf16.mxu0 %v3077_v48 }
 0x199   : > { %2171 = vmatmul.mubr.f32.vlgmr.msra.gmra.mrb[8].mxu0 %v683_v35 }
 0x19a   : > { %2173 = vmatprep.mubr.f32.mxu0 %v912_v41  ;;  %2209 = vmatmul.mubr.f32.vlgmr.msra.gmra.mrb[24].mxu1 %v685_v36 }
 0x19b   : > { %2427 = vmatpush3.bf16.msra.mxu0 %v3077_v48  ;;  %2211 = vmatprep.mubr.f32.mxu1 %v914_v42 }
 0x19c   : > { %2429 = vmatprep.subr.bf16.mxu0 %v3086_v54 }
 0x19d   : > { %2174 = vmatmul.mubr.f32.gmra.mrb[10].mxu0 %v1141_v33 }
 0x19e   : > { %2212 = vmatmul.mubr.f32.gmra.mrb[26].mxu1 %v1143_v34  ;;  %2246 = vmatprep.mubr.f32.mxu0 %v3177_v27 }
 0x19f   : > { %2431 = vmatpush3.bf16.msra.mxu0 %v3086_v54 }
 0x1a0   : > { %2433 = vmatprep.subr.bf16.mxu0 %v3102_v61 }
 0x1a3   : > { %2435 = vmatpush3.bf16.msra.mxu0 %v3102_v61 }
 0x1a4   : > { %2437 = vmatprep.subr.bf16.mxu0 %v3116_v6 }
 0x1a7   : > { %2439 = vmatpush3.bf16.msra.mxu0 %v3116_v6 }
 0x1a8   : > { %2441 = vmatprep.subr.bf16.mxu0 %v3125_v11 }
 0x1ab   : > { %2443 = vmatpush3.bf16.msra.mxu0 %v3125_v11 }
 0x1ac   : > { %2445 = vmatprep.subr.bf16.mxu0 %v3157_v15 }
 0x1af   : > { %2447 = vmatpush3.bf16.msra.mxu0 %v3157_v15 }
 0x1b0   : > { %2449 = vmatprep.subr.bf16.mxu0 %v3163_v19 }
 0x1b3   : > { %2451 = vmatpush3.bf16.msra.mxu0 %v3163_v19 }
 0x1b4   : > { %2453 = vmatprep.subr.bf16.mxu0 %v3169_v22 }
 0x1b7   : > { %2455 = vmatpush3.bf16.msra.mxu0 %v3169_v22 }
 0x1ba   : > { %2247 = vmatmul.mubr.f32.vlgmr.msra.gmra.mrb[12].mxu0 %v754_v37 }
 0x1bb   : > { %2249 = vmatprep.mubr.f32.mxu0 %v3179_v29 }
 0x1be   : > { %2250 = vmatmul.mubr.f32.gmra.mrb[14].mxu0 %v1212_v45 }
 0x24c   : > { %v2096_v47 = vpop.f32.mrb[4].mxu0 }
 0x24d   : > { %v1667_v48 = vmul.f32 %v2096_v47, %v2096_v47  ;;  %v1291_v49 = vpop.f32.mrb[5].mxu0  ;;  %v2134_v50 = vpop.f32.mrb[20].mxu1 }
 0x24e   : > { %v1666_v51 = vmul.f32 %v1291_v49, %v1291_v49  ;;  %v1671_v52 = vmul.f32 %v2134_v50, %v2134_v50  ;;  %v1675_v53 = vmul.f32 %v2134_v50, %v2096_v47  ;;  %v1380_v54 = vpop.f32.mrb[21].mxu1 }
 0x24f   : > { %v1670_v55 = vmul.f32 %v1380_v54, %v1380_v54  ;;  %v1674_v56 = vmul.f32 %v1380_v54, %v1291_v49 }
 0x250   : > { %v1711_v57 = vadd.f32 %v1671_v52, %v1667_v48  ;;  %v1691_v39 = vmul.f32 2.0, %v1675_v53 }
 0x251   : > { %v1710_v58 = vadd.f32 %v1670_v55, %v1666_v51  ;;  %v1690_v43 = vmul.f32 2.0, %v1674_v56 }
 0x252   : > { %v1715_v21 = vadd.f32 0.0001, %v1711_v57  ;;  %v1695_v46 = vadd.f32 0.0001, %v1691_v39 }
 0x253   : > { %v1714_v26 = vadd.f32 0.0001, %v1710_v58  ;;  %v1694_v54 = vadd.f32 0.0001, %v1690_v43 }
 0x260   : > { %v2099_v59 = vpop.f32.mrb[6].mxu0 }
 0x261   : > { %v1669_v60 = vmul.f32 %v2099_v59, %v2099_v59  ;;  %v2137_v61 = vpop.f32.mrb[22].mxu1  ;;  %v1301_v62 = vpop.f32.mrb[7].mxu0 }
 0x262   : > { %v1673_v63 = vmul.f32 %v2137_v61, %v2137_v61  ;;  %v1677_v2 = vmul.f32 %v2137_v61, %v2099_v59  ;;  %v1668_v3 = vmul.f32 %v1301_v62, %v1301_v62  ;;  %v1390_v4 = vpop.f32.mrb[23].mxu1 }
 0x263   : > { %v1672_v5 = vmul.f32 %v1390_v4, %v1390_v4  ;;  %v1676_v6 = vmul.f32 %v1390_v4, %v1301_v62 }
 0x264   : > { %v1713_v7 = vadd.f32 %v1673_v63, %v1669_v60  ;;  %v1693_v49 = vmul.f32 2.0, %v1677_v2 }
 0x265   : > { %v1712_v8 = vadd.f32 %v1672_v5, %v1668_v3 }
 0x266   : > { %v1717_v33 = vadd.f32 0.0001, %v1713_v7  ;;  %v1697_v62 = vadd.f32 0.0001, %v1693_v49 }
 0x267   : > { %v1716_v35 = vadd.f32 0.0001, %v1712_v8 }
 0x26c   : > { %v2172_v9 = vpop.f32.mrb[8].mxu0 }
 0x26d   : > { %v1679_v10 = vsub.f32 %v2172_v9, %v1667_v48  ;;  %v1469_v11 = vpop.f32.mrb[9].mxu0  ;;  %v2210_v12 = vpop.f32.mrb[24].mxu1 }
 0x26e   : > { %v1678_v13 = vsub.f32 %v1469_v11, %v1666_v51  ;;  %v1683_v14 = vsub.f32 %v2210_v12, %v1671_v52  ;;  %v1558_v16 = vpop.f32.mrb[25].mxu1 }
 0x26f   : > { %v1682_v0 = vsub.f32 %v1558_v16, %v1670_v55  ;;  %v1692_v55 = vmul.f32 2.0, %v1676_v6 }
 0x270   : > { %v1719_v1 = vadd.f32 %v1683_v14, %v1679_v10  ;;  %v2175_v15 = vpop.f32.mrb[10].mxu0 }
 0x271   : > { %v1718_v17 = vadd.f32 %v1682_v0, %v1678_v13  ;;  %v1681_v18 = vsub.f32 %v2175_v15, %v1669_v60  ;;  %v1479_v19 = vpop.f32.mrb[11].mxu0  ;;  %v2213_v20 = vpop.f32.mrb[26].mxu1  ;;  %v1696_v4 = vadd.f32 0.0001, %v1692_v55 }
 0x272   : > { %v1723_v22 = vadd.f32 0.0009, %v1719_v1  ;;  %v1680_v23 = vsub.f32 %v1479_v19, %v1668_v3  ;;  %v1685_v24 = vsub.f32 %v2213_v20, %v1673_v63  ;;  %v1568_v25 = vpop.f32.mrb[27].mxu1 }
 0x273   : > { %v1722_v27 = vadd.f32 0.0009, %v1718_v17  ;;  %v1684_v28 = vsub.f32 %v1568_v25, %v1672_v5 }
 0x274   : > { %v1727_v29 = vmul.f32 %v1723_v22, %v1715_v21  ;;  %v1721_v30 = vadd.f32 %v1685_v24, %v1681_v18 }
 0x275   : > { %v1726_v31 = vmul.f32 %v1722_v27, %v1714_v26  ;;  %v1720_v32 = vadd.f32 %v1684_v28, %v1680_v23 }
 0x276   : > { %v1725_v34 = vadd.f32 0.0009, %v1721_v30  ;;  %2533 = vrcp.f32 %v1727_v29 }
 0x277   : > { %v1724_v36 = vadd.f32 0.0009, %v1720_v32  ;;  %2535 = vrcp.f32 %v1726_v31 }
 0x278   : > { %v1729_v37 = vmul.f32 %v1725_v34, %v1717_v33 }
 0x279   : > { %v1728_v38 = vmul.f32 %v1724_v36, %v1716_v35 }
 0x27a   : > { %2537 = vrcp.f32 %v1729_v37 }
 0x27b   : > { %2539 = vrcp.f32 %v1728_v38 }
 0x280   : > { %v2534_v3 = vpop.eup %2533 }
 0x281   : > { %v2536_v8 = vpop.eup %2535 }
 0x28d   : > { %v2248_v40 = vpop.f32.mrb[12].mxu0 }
 0x28e   : > { %v1687_v41 = vsub.f32 %v2248_v40, %v1675_v53  ;;  %v1647_v42 = vpop.f32.mrb[13].mxu0 }
 0x28f   : > { %v1686_v44 = vsub.f32 %v1647_v42, %v1674_v56 }
 0x290   : > { %v1699_v45 = vmul.f32 2.0, %v1687_v41 }
 0x291   : > { %v1698_v47 = vmul.f32 2.0, %v1686_v44  ;;  %v2251_v48 = vpop.f32.mrb[14].mxu0 }
 0x292   : > { %v1703_v50 = vadd.f32 0.0009, %v1699_v45  ;;  %v1689_v51 = vsub.f32 %v2251_v48, %v1677_v2  ;;  %v1657_v52 = vpop.f32.mrb[15].mxu0 }
 0x293   : > { %v1702_v57 = vadd.f32 0.0009, %v1698_v47  ;;  %v1688_v58 = vsub.f32 %v1657_v52, %v1676_v6  ;;  %v2538_v6 = vpop.eup %2537 }
 0x294   : > { %v1707_v59 = vmul.f32 %v1703_v50, %v1695_v46  ;;  %v1701_v60 = vmul.f32 2.0, %v1689_v51  ;;  %v2540_v16 = vpop.eup %2539 }
 0x295   : > { %v1706_v53 = vmul.f32 %v1702_v57, %v1694_v54  ;;  %v1700_v61 = vmul.f32 2.0, %v1688_v58 }
 0x296   : > { %v1731_v56 = vsub.f32 %v1707_v59, %v1727_v29  ;;  %v1705_v63 = vadd.f32 0.0009, %v1701_v60 }
 0x297   : > { %v1730_v5 = vsub.f32 %v1706_v53, %v1726_v31  ;;  %v1704_v7 = vadd.f32 0.0009, %v1700_v61 }
 0x298   : > { %v1737_v9 = vmul.f32 %v2534_v3, %v1731_v56  ;;  %v1709_v10 = vmul.f32 %v1705_v63, %v1697_v62 }
 0x299   : > { %v1735_v2 = vmul.f32 %v2536_v8, %v1730_v5  ;;  %v1708_v11 = vmul.f32 %v1704_v7, %v1696_v4 }
 0x29a   : > { %v1733_v12 = vsub.f32 %v1709_v10, %v1729_v37 }
 0x29b   : > { %v1742_v13 = vadd.f32 %v1737_v9, %v1735_v2  ;;  %v1732_v14 = vsub.f32 %v1708_v11, %v1728_v38 }
 0x29c   : > { %v1741_v0 = vmul.f32 %v2538_v6, %v1733_v12 }
 0x29d   : > { %v1739_v1 = vmul.f32 %v2540_v16, %v1732_v14 }
 0x29f   : > { %v1743_v15 = vadd.f32 %v1742_v13, %v1739_v1 }
 0x2a1   : > { %v1744_v17 = vadd.f32 %v1743_v15, %v1741_v0 }
 0x2a3   : > { %v1745_v18 = vrot.slane %v1744_v17, 4 }
 0x2a5   : > { %v1746_v19 = vadd.f32 %v1745_v18, %v1744_v17 }
 0x2a7   : > { %v1747_v20 = vrot.slane %v1746_v19, 2 }
 0x2a9   : > { %v1748_v21 = vadd.f32 %v1747_v20, %v1746_v19 }
 0x2ab   : > { %v1749_v22 = vrot.slane %v1748_v21, 1 }
 0x2ad   : > { %v1750_v23 = vadd.f32 %v1749_v22, %v1748_v21 }
 0x2af   : > { %1751 = vst [vmem:[%s283_s25] sm:$0x1] %v1750_v23 }
 0x2b0   : > { %2670 = shalt.err (!%p2667_p5)
}
 0x2b1   : > { %s2671_s30 = scalar_lea.hbm %s3234_s9, 16  ;;  %s2675_s22 = scalar_lea.hbm %s3282_s4, 32 }
 0x2b2   : > { %p2672_p1 = scmp.ne.s32.totalorder %s3234_s9, %s2671_s30  ;;  %p2676_p10 = scmp.lt.u32.totalorder %s3234_s9, %s3282_s4 }
 0x2b3   : > { %p2677_p2 = scmp.lt.u32.totalorder %s2675_s22, %s2671_s30  ;;  %p2679_p7 = scmp.lt.u32.totalorder %s2671_s30, %s3234_s9 }
 0x2b4   : > { %p2673_p8 = pnand %p2672_p1, %p3307_p6 }
 0x2b5   : > { %p2678_p0 = por %p2677_p2, %p2676_p10 }
 0x2b6   : > { %p2674_p9 = pneg %p2673_p8 }
 0x2b7   : > { %p2680_p12 = por %p2679_p7, %p2678_p0 }
 0x2b9   : > { %p2681_p13 = pnand %p2680_p12, %p2674_p9 }
 0x2bb   : > { %2684 = shalt.err (!%p2681_p13)
}
 0x2bc   : > { %2468 = dma.vmem_to_hbm [thread:$0]  (%p3307_p6), %s3236_s14, 16, %s3234_s9, %s1753_s10  }
 0x2bd PF: > { %s1777_s29 = sand.u32 1, %s2723_s15   ;;  %p3308_p11 = scmp.ne.s32.totalorder %s3293_s28, 0 }
 0x2be   : > { %p3309_p3 = scmp.ge.s32.totalorder %s2735_s18, 2  ;;  %s1778_s23 = scalar_lea.sflag [#allocation5], %s1777_s29 }
 0x2c0   : > { %p2485_p4 = pnand %p3309_p3, %p3308_p11 }
 0x2c2   : > { %2718 = dma.done.wait (!%p2485_p4), %s1778_s23, 16  }
 0x2c3   : > { %2720 = vsyncadd (!%p2485_p4), %s1778_s23, 4294967280  ;;  %p21_p5 = scmp.ge.s32.totalorder %s2797_s21, 4   ;;  %s3310_s15 = smov %s2727_s16 }
 0x2c4   : > { %s3311_s16 = smov %s2731_s17  ;;  %s3312_s17 = smov %s2809_s24 }
 0x2c5   : > { %s3313_s18 = smov %s2797_s21  ;;  %23 = sbr.rel (!%p21_p5) target bundleno = 10 (0xa), region = 108 }
 0x2cc   :  { %1782 = vsyncpa [#allocation4], 1 }
 0x2cd   :  { %1784 = vsyncpa [#allocation4 + $0x1], 1 }
 0x2ce   :  { %1785 = vsyncpa [#allocation7], 1 }
 0x2cf   :  { %1787 = vsyncpa [#allocation7 + $0x1], 1 }
 0x2d0   :  { %1788 = vsyncpa [#allocation10], 1 }
 0x2d1   :  { %1789 = vsyncpa [#allocation5], 1 }
 0x2d2   :  { %1791 = vsyncpa [#allocation5 + $0x1], 1 }

</bundles_post_ra>
